<compile_context>
chip_gen: v7x
topology: tpu7x:2x2x1
jax: 0.10.0
libtpu: 0.0.40
codegen_flags: <defaults>
</compile_context>

<pallas_src>
import functools
import math

import jax
import jax.numpy as jnp
from jax.experimental import pallas as pl
from jax.experimental.pallas import tpu as pltpu


_TARGET_BLOCK_BYTES = 4 * 1024 * 1024   # ~4 MiB logits block per pipeline buffer
_MAX_PIPELINE_VMEM = 24 * 1024 * 1024   # conservative cap (v7x: 64 MiB physical)


def _round_up(x, m):
    return ((x + m - 1) // m) * m


def _round_down(x, m):
    return (x // m) * m


def _pick_outer_factor(num_tiles):
    # Smallest factor >= 2 so the spatial-tile axis can shard across the two
    # TensorCores on v7x (harmless on v5e/v6e). Prime counts fall back to 1.
    for f in (2, 3, 4, 5, 6, 7, 8):
        if num_tiles >= f and num_tiles % f == 0:
            return f
    return 1


def _dsc_kernel(x_ref, t_ref, o_ref, cls_ref, *, alpha, smooth, spatial, tile,
                n_inner, num_tiles, need_mask):
    # x_ref: (Nb, C, TILE) logits block; t_ref: (Nb, 1, TILE) int32 targets;
    # o_ref: (Nb, 1, TILE) f32 accumulator (same block across the inner grid
    #        axis -> resident accumulator); cls_ref: (C, TILE) int32 scratch.
    o = pl.program_id(1)
    ti = pl.program_id(2)

    @pl.when(ti == 0)
    def _():
        o_ref[...] = jnp.zeros_like(o_ref)
        # Grid-invariant class-index iota kept in persistent VMEM scratch.
        cls_ref[...] = jax.lax.broadcasted_iota(jnp.int32, cls_ref.shape, 0)

    x = x_ref[...].astype(jnp.float32)             # (Nb, C, TILE)
    tgt = t_ref[...]                               # (Nb, 1, TILE) int32

    # Numerically-stable channel softmax gathered at the target class, WITHOUT
    # materializing the full probability tensor:
    #   p_true = exp(x_true - m) / sum_C exp(x - m)
    m = jnp.max(x, axis=1, keepdims=True)          # (Nb, 1, TILE)
    e = jnp.exp(x - m)                             # (Nb, C, TILE)  (EUP)
    s = jnp.sum(e, axis=1, keepdims=True)          # (Nb, 1, TILE)
    cls = cls_ref[...][None, :, :]                 # (1, C, TILE)
    e_true = jnp.sum(jnp.where(cls == tgt, e, 0.0), axis=1, keepdims=True)
    p = e_true / s                                 # (Nb, 1, TILE)

    if alpha == 1.0:                               # static python branch
        factor = 1.0 - p
    else:
        factor = jnp.power(1.0 - p, jnp.float32(alpha))
    pwf = factor * p
    loss = 1.0 - (2.0 * pwf + smooth) / (pwf + 1.0 + smooth)   # (Nb, 1, TILE)

    if not need_mask:
        # S is a multiple of the tile: no mask work in any step.
        o_ref[...] += loss
    else:
        glob = o * n_inner + ti                    # global spatial-tile index

        @pl.when(glob < num_tiles - 1)
        def _():
            o_ref[...] += loss

        @pl.when(glob == num_tiles - 1)
        def _():
            # Drop lanes beyond the true spatial extent (padded HBM region may
            # hold garbage/NaN; all reductions above are channel-only so padded
            # lanes never contaminate valid lanes).
            lane = jax.lax.broadcasted_iota(jnp.int32, loss.shape, 2)
            valid = (glob * tile + lane) < spatial
            o_ref[...] += jnp.where(valid, loss, 0.0)


def dsc_loss(logits, targets, alpha=1.0, smooth=1.0, reduction="mean",
             tile_hw=None, target_block_bytes=_TARGET_BLOCK_BYTES):
    """logits: (N, C, *spatial); targets: (N, *spatial) integer class indices."""
    N, C = logits.shape[0], logits.shape[1]
    spatial_dims = logits.shape[2:]
    S = int(math.prod(spatial_dims)) if spatial_dims else 1

    # Keep the source dtype (bf16 passthrough halves HBM traffic); the kernel
    # upcasts per block.
    x = logits.reshape(N, C, S)
    t = targets.reshape(N, 1, S).astype(jnp.int32)
    itemsize = jnp.dtype(x.dtype).itemsize

    # --- Lane tile sized by bytes (multiple of 128); tile_hw is only a cap.
    S_rounded = _round_up(S, 128)
    tile = _round_down(max(target_block_bytes // max(C * itemsize, 1), 128), 128)
    tile = max(tile, 128)
    tile = min(tile, S_rounded)
    if tile_hw is not None:
        tile = min(tile, max(128, _round_up(int(tile_hw), 128)))
    num_tiles = pl.cdiv(S, tile)

    # --- Fold batch rows per block when a full row is still small, restoring
    # multi-MB DMAs for small-S workloads.
    Nb = 1
    if num_tiles == 1 and N > 1:
        row_bytes = C * tile * itemsize
        cap = max(1, int(target_block_bytes // max(row_bytes, 1)))
        for cand in range(min(N, cap), 0, -1):
            if N % cand == 0:
                Nb = cand
                break

    # --- Split the spatial-tile axis so it can shard across TensorCores (v7x);
    # only the inner axis accumulates.
    n_outer = _pick_outer_factor(num_tiles)
    n_inner = num_tiles // n_outer
    need_mask = (S % tile) != 0

    # --- Explicit VMEM budget: double-buffered inputs/outputs + iota scratch.
    block_in = Nb * C * tile * itemsize + Nb * tile * 4
    block_out = Nb * tile * 4
    scratch_bytes = C * tile * 4
    pipeline_bytes = 2 * (block_in + block_out) + scratch_bytes
    vmem_limit = int(min(32 * 1024 * 1024,
                         max(pipeline_bytes * 1.5 + (1 << 20), 8 * 1024 * 1024)))

    cost = pl.CostEstimate(
        flops=12 * N * C * S,
        transcendentals=N * C * S,
        bytes_accessed=N * C * S * itemsize + N * S * 4 + N * n_outer * tile * 4,
    )

    kernel = functools.partial(
        _dsc_kernel, alpha=float(alpha), smooth=float(smooth), spatial=S,
        tile=tile, n_inner=n_inner, num_tiles=num_tiles, need_mask=need_mask)

    partial = pl.pallas_call(
        kernel,
        out_shape=jax.ShapeDtypeStruct((N, n_outer, tile), jnp.float32),
        grid_spec=pltpu.PrefetchScalarGridSpec(
            num_scalar_prefetch=0,
            grid=(N // Nb, n_outer, n_inner),
            in_specs=[
                pl.BlockSpec((Nb, C, tile),
                             lambda nb, o, ti: (nb, 0, o * n_inner + ti)),
                pl.BlockSpec((Nb, 1, tile),
                             lambda nb, o, ti: (nb, 0, o * n_inner + ti)),
            ],
            out_specs=pl.BlockSpec((Nb, 1, tile),
                                   lambda nb, o, ti: (nb, o, 0)),
            scratch_shapes=[pltpu.VMEM((C, tile), jnp.int32)],
        ),
        compiler_params=pltpu.CompilerParams(
            dimension_semantics=("parallel", "parallel", "arbitrary"),
            vmem_limit_bytes=vmem_limit),
        cost_estimate=cost,
    )(x, t)

    total = jnp.sum(partial, dtype=jnp.float32)
    if reduction == "mean":
        return total / jnp.float32(N * S)
    elif reduction == "sum":
        return total
    # TODO(synk): reduction='none' (per-element loss tensor) not implemented.
    raise ValueError(f"unsupported reduction: {reduction!r}")


def _reference(logits, targets, alpha=1.0, smooth=1.0, reduction="mean"):
    # pure-JAX reference mirroring the PyTorch module
    probs = jax.nn.softmax(logits.astype(jnp.float32), axis=1)
    idx = jnp.expand_dims(targets.astype(jnp.int32), 1)
    p = jnp.take_along_axis(probs, idx, axis=1)
    if alpha == 1.0:
        factor = 1.0 - p
    else:
        factor = jnp.power(1.0 - p, jnp.float32(alpha))
    pwf = factor * p
    loss = 1.0 - (2.0 * pwf + smooth) / (pwf + 1.0 + smooth)
    return jnp.mean(loss) if reduction == "mean" else jnp.sum(loss)


if __name__ == "__main__":
    key = jax.random.PRNGKey(0)
    keys = jax.random.split(key, 8)

    # Case 1: small spatial extent -> multi-batch block path (Nb = N), one tile.
    N, C, H, W = 2, 4, 16, 16
    logits = jax.random.normal(keys[0], (N, C, H, W), dtype=jnp.float32)
    targets = jax.random.randint(keys[1], (N, H, W), 0, C, dtype=jnp.int32)
    out = jax.block_until_ready(dsc_loss(logits, targets))
    ref = jax.block_until_ready(_reference(logits, targets))
    assert jnp.allclose(out, ref, atol=1e-5, rtol=1e-5), (out, ref)

    # Case 2: capped tile -> 4 tiles: outer split (2) x inner accumulation (2),
    # plus alpha != 1 power path.
    H2, W2 = 16, 32
    logits2 = jax.random.normal(keys[2], (N, C, H2, W2), dtype=jnp.float32)
    targets2 = jax.random.randint(keys[3], (N, H2, W2), 0, C, dtype=jnp.int32)
    out2 = jax.block_until_ready(dsc_loss(logits2, targets2, alpha=2.0, tile_hw=128))
    ref2 = jax.block_until_ready(_reference(logits2, targets2, alpha=2.0))
    assert jnp.allclose(out2, ref2, atol=1e-5, rtol=1e-5), (out2, ref2)

    # Case 3: non-divisible spatial extent -> remainder-tile masking + 'sum'.
    H3, W3 = 16, 17
    logits3 = jax.random.normal(keys[4], (N, C, H3, W3), dtype=jnp.float32)
    targets3 = jax.random.randint(keys[5], (N, H3, W3), 0, C, dtype=jnp.int32)
    out3 = jax.block_until_ready(
        dsc_loss(logits3, targets3, reduction="sum", tile_hw=128))
    ref3 = jax.block_until_ready(_reference(logits3, targets3, reduction="sum"))
    assert jnp.allclose(out3, ref3, atol=1e-4, rtol=1e-5), (out3, ref3)

    # Case 4: remainder tile in the last inner step of a multi-step sweep, with
    # bf16 logits passed through unchanged (kernel upcasts per block).
    H4, W4 = 16, 42
    logits4 = jax.random.normal(keys[6], (N, C, H4, W4), dtype=jnp.bfloat16)
    targets4 = jax.random.randint(keys[7], (N, H4, W4), 0, C, dtype=jnp.int32)
    out4 = jax.block_until_ready(dsc_loss(logits4, targets4, tile_hw=128))
    ref4 = jax.block_until_ready(_reference(logits4, targets4))
    assert jnp.allclose(out4, ref4, atol=1e-4, rtol=1e-4), (out4, ref4)

    print("KERNEL_OK")
</pallas_src>

<mosaic_0001>
module attributes {stable_mosaic.version = 11 : i64} {
  func.func @_dsc_kernel(%arg0: i32, %arg1: i32, %arg2: i32, %arg3: memref<2x4x256xf32, #tpu.memory_space<vmem>>, %arg4: memref<2x1x256xi32, #tpu.memory_space<vmem>>, %arg5: memref<2x1x256xf32, #tpu.memory_space<vmem>>, %arg6: memref<4x256xi32, #tpu.memory_space<vmem>>) attributes {dimension_semantics = [#tpu.dimension_semantics<parallel>, #tpu.dimension_semantics<parallel>, #tpu.dimension_semantics<arbitrary>], iteration_bounds = array<i64: 1, 1, 1>, scalar_prefetch = 0 : i64, scratch_operands = 1 : i64, tpu.core_type = #tpu.core_type<tc>, window_params = [{transform_indices = @transform_0, window_bounds = array<i64: 2, 4, 256>}, {transform_indices = @transform_1, window_bounds = array<i64: 2, 1, 256>}, {transform_indices = @transform_2, window_bounds = array<i64: 2, 1, 256>}]} {
    %c0_i32 = arith.constant 0 : i32
    %0 = arith.cmpi eq, %arg2, %c0_i32 : i32
    %1 = arith.extui %0 : i1 to i32
    %c0_i32_0 = arith.constant 0 : i32
    %2 = arith.cmpi ne, %1, %c0_i32_0 : i32
    scf.if %2 {
      %cst_23 = arith.constant 0.000000e+00 : f32
      %39 = vector.broadcast %cst_23 : f32 to vector<2x1x256xf32>
      %c0_24 = arith.constant 0 : index
      %c0_25 = arith.constant 0 : index
      %c0_26 = arith.constant 0 : index
      %40 = vector.load %arg5[%c0_24, %c0_25, %c0_26] : memref<2x1x256xf32, #tpu.memory_space<vmem>>, vector<2x1x256xf32>
      tpu.vector_store %arg5[%c0_24, %c0_25, %c0_26], %39 {strides = array<i32>} : memref<2x1x256xf32, #tpu.memory_space<vmem>>, vector<2x1x256xf32>,
      %41 = tpu.iota {dimensions = array<i32: 0>} : vector<4x256xi32>
      %c0_27 = arith.constant 0 : index
      %c0_28 = arith.constant 0 : index
      %42 = vector.load %arg6[%c0_27, %c0_28] : memref<4x256xi32, #tpu.memory_space<vmem>>, vector<4x256xi32>
      tpu.vector_store %arg6[%c0_27, %c0_28], %41 {strides = array<i32>} : memref<4x256xi32, #tpu.memory_space<vmem>>, vector<4x256xi32>,
    } else {
    }
    %c0 = arith.constant 0 : index
    %c0_1 = arith.constant 0 : index
    %c0_2 = arith.constant 0 : index
    %3 = vector.load %arg3[%c0, %c0_1, %c0_2] : memref<2x4x256xf32, #tpu.memory_space<vmem>>, vector<2x4x256xf32>
    %c0_3 = arith.constant 0 : index
    %c0_4 = arith.constant 0 : index
    %c0_5 = arith.constant 0 : index
    %4 = vector.load %arg4[%c0_3, %c0_4, %c0_5] : memref<2x1x256xi32, #tpu.memory_space<vmem>>, vector<2x1x256xi32>
    %cst = arith.constant dense<0xFF800000> : vector<2x256xf32>
    %5 = vector.multi_reduction <maximumf>, %3, %cst [1] : vector<2x4x256xf32> to vector<2x256xf32>
    %6 = vector.shape_cast %5 : vector<2x256xf32> to vector<2x1x256xf32>
    %7 = vector.broadcast %6 : vector<2x1x256xf32> to vector<2x4x256xf32>
    %8 = arith.subf %3, %7 : vector<2x4x256xf32>
    %9 = math.exp %8 : vector<2x4x256xf32>
    %cst_6 = arith.constant dense<0.000000e+00> : vector<2x256xf32>
    %10 = vector.multi_reduction <add>, %9, %cst_6 [1] : vector<2x4x256xf32> to vector<2x256xf32>
    %11 = vector.shape_cast %10 : vector<2x256xf32> to vector<2x1x256xf32>
    %c0_7 = arith.constant 0 : index
    %c0_8 = arith.constant 0 : index
    %12 = vector.load %arg6[%c0_7, %c0_8] : memref<4x256xi32, #tpu.memory_space<vmem>>, vector<4x256xi32>
    %13 = vector.shape_cast %12 : vector<4x256xi32> to vector<1x4x256xi32>
    %14 = vector.broadcast %13 : vector<1x4x256xi32> to vector<2x4x256xi32>
    %15 = vector.broadcast %4 : vector<2x1x256xi32> to vector<2x4x256xi32>
    %16 = arith.cmpi eq, %14, %15 : vector<2x4x256xi32>
    %cst_9 = arith.constant 0.000000e+00 : f32
    %17 = vector.broadcast %cst_9 : f32 to vector<2x4x256xf32>
    %18 = arith.select %16, %9, %17 : vector<2x4x256xi1>, vector<2x4x256xf32>
    %cst_10 = arith.constant dense<0.000000e+00> : vector<2x256xf32>
    %19 = vector.multi_reduction <add>, %18, %cst_10 [1] : vector<2x4x256xf32> to vector<2x256xf32>
    %20 = vector.shape_cast %19 : vector<2x256xf32> to vector<2x1x256xf32>
    %21 = arith.divf %20, %11 : vector<2x1x256xf32>
    %cst_11 = arith.constant 1.000000e+00 : f32
    %22 = vector.broadcast %cst_11 : f32 to vector<2x1x256xf32>
    %23 = arith.subf %22, %21 : vector<2x1x256xf32>
    %24 = arith.mulf %23, %21 : vector<2x1x256xf32>
    %cst_12 = arith.constant 2.000000e+00 : f32
    %25 = vector.broadcast %cst_12 : f32 to vector<2x1x256xf32>
    %26 = arith.mulf %25, %24 : vector<2x1x256xf32>
    %cst_13 = arith.constant 1.000000e+00 : f32
    %27 = vector.broadcast %cst_13 : f32 to vector<2x1x256xf32>
    %28 = arith.addf %26, %27 : vector<2x1x256xf32>
    %cst_14 = arith.constant 1.000000e+00 : f32
    %29 = vector.broadcast %cst_14 : f32 to vector<2x1x256xf32>
    %30 = arith.addf %24, %29 : vector<2x1x256xf32>
    %cst_15 = arith.constant 1.000000e+00 : f32
    %31 = vector.broadcast %cst_15 : f32 to vector<2x1x256xf32>
    %32 = arith.addf %30, %31 : vector<2x1x256xf32>
    %33 = arith.divf %28, %32 : vector<2x1x256xf32>
    %cst_16 = arith.constant 1.000000e+00 : f32
    %34 = vector.broadcast %cst_16 : f32 to vector<2x1x256xf32>
    %35 = arith.subf %34, %33 : vector<2x1x256xf32>
    %c0_17 = arith.constant 0 : index
    %c0_18 = arith.constant 0 : index
    %c0_19 = arith.constant 0 : index
    %36 = vector.load %arg5[%c0_17, %c0_18, %c0_19] : memref<2x1x256xf32, #tpu.memory_space<vmem>>, vector<2x1x256xf32>
    %37 = arith.addf %36, %35 : vector<2x1x256xf32>
    %c0_20 = arith.constant 0 : index
    %c0_21 = arith.constant 0 : index
    %c0_22 = arith.constant 0 : index
    %38 = vector.load %arg5[%c0_20, %c0_21, %c0_22] : memref<2x1x256xf32, #tpu.memory_space<vmem>>, vector<2x1x256xf32>
    tpu.vector_store %arg5[%c0_20, %c0_21, %c0_22], %37 {strides = array<i32>} : memref<2x1x256xf32, #tpu.memory_space<vmem>>, vector<2x1x256xf32>,
    return
  }
  func.func @transform_0(%arg0: i32, %arg1: i32, %arg2: i32) -> (i32, i32, i32) {
    %c1_i32 = arith.constant 1 : i32
    %0 = arith.muli %arg1, %c1_i32 : i32
    %1 = arith.addi %0, %arg2 : i32
    %c0_i32 = arith.constant 0 : i32
    %c0_i32_0 = arith.constant 0 : i32
    return %arg0, %c0_i32, %1 : i32, i32, i32
  }
  func.func @transform_1(%arg0: i32, %arg1: i32, %arg2: i32) -> (i32, i32, i32) {
    %c1_i32 = arith.constant 1 : i32
    %0 = arith.muli %arg1, %c1_i32 : i32
    %1 = arith.addi %0, %arg2 : i32
    %c0_i32 = arith.constant 0 : i32
    %c0_i32_0 = arith.constant 0 : i32
    return %arg0, %c0_i32, %1 : i32, i32, i32
  }
  func.func @transform_2(%arg0: i32, %arg1: i32, %arg2: i32) -> (i32, i32, i32) {
    %c0_i32 = arith.constant 0 : i32
    %c0_i32_0 = arith.constant 0 : i32
    return %arg0, %arg1, %c0_i32 : i32, i32, i32
  }
}

</mosaic_0001>

<bundles_post_ra>
// kernel: tpu_custom_call.1
= control target key start
LH: loop header
LB: loop body
LE: loop exit
PB: predicated region body
PF: predicated region fallthrough
CT: control target
= control target key end

     0   :  { %7 = vsyncpa [#allocation4], 0  ;;  %s526_s0 = inlined_call_operand.hbm [shape: f32[2,4,256], index: 0, kind: input, shape index: {}]   ;;  %s527_s1 = inlined_call_operand.hbm [shape: s32[2,1,256], index: 1, kind: input, shape index: {}]   ;;  %s528_s2 = inlined_call_operand.hbm [shape: f32[2,1,256], index: 2, kind: output, shape index: {}]  }
   0x1   :  { %8 = vsyncpa [#allocation7], 0 }
   0x2   :  { %9 = vsyncpa [#allocation5], 0  ;;  %s428_s9 = smov [#allocation3]   ;;  %s356_s13 = scalar_lea.hbm %s526_s0, 256 }
   0x3   :  { %s19_s10 = sshll.u32 %s428_s9, 4  ;;  %p357_p0 = scmp.ne.s32.totalorder %s526_s0, %s356_s13  ;;  %s20_s10 = int_to_ptr.vmem [resolvable:$true] %s19_s10 }
   0x4   :  { %p360_p1 = scmp.lt.u32.totalorder %s356_s13, %s526_s0 }
   0x6   :  { %p362_p2 = pnand %p360_p1, %p357_p0 }
   0x8   :  { %365 = shalt.err (!%p362_p2)
}
   0x9   :  { %s366_s18 = scalar_lea.vmem %s20_s10, 256  ;;  %p371_p4 = scmp.lt.s32.totalorder %s20_s10, %s20_s10 }
   0xa   :  { %p367_p3 = scmp.ne.s32.totalorder %s20_s10, %s366_s18  ;;  %p372_p5 = scmp.lt.s32.totalorder %s366_s18, %s366_s18 }
   0xc   :  { %p373_p6 = por %p372_p5, %p371_p4 }
   0xe   :  { %p374_p7 = pnand %p373_p6, %p367_p3 }
  0x10   :  { %377 = shalt.err (!%p374_p7)
}
  0x11   :  { %s429_s19 = smov 128   ;;  %s430_s20 = smov 8  }
  0x12   :  { %25 = dma.hbm_to_vmem [thread:$0]  %s526_s0, 256, %s20_s10, [#allocation4], %s429_s19, %s429_s19, %s430_s20  }
  0x13   :  { %s431_s23 = smov [#allocation6]   ;;  %s378_s27 = scalar_lea.hbm %s527_s1, 64 }
  0x14   :  { %s35_s24 = sshll.u32 %s431_s23, 4  ;;  %p379_p8 = scmp.ne.s32.totalorder %s527_s1, %s378_s27  ;;  %s36_s24 = int_to_ptr.vmem [resolvable:$true] %s35_s24 }
  0x15   :  { %p382_p9 = scmp.lt.u32.totalorder %s378_s27, %s527_s1 }
  0x17   :  { %p384_p10 = pnand %p382_p9, %p379_p8 }
  0x19   :  { %387 = shalt.err (!%p384_p10)
}
  0x1a   :  { %s388_s4 = scalar_lea.vmem %s36_s24, 64  ;;  %p393_p12 = scmp.lt.s32.totalorder %s36_s24, %s36_s24 }
  0x1b   :  { %p389_p11 = scmp.ne.s32.totalorder %s36_s24, %s388_s4  ;;  %p394_p13 = scmp.lt.s32.totalorder %s388_s4, %s388_s4 }
  0x1d   :  { %p395_p0 = por %p394_p13, %p393_p12 }
  0x1f   :  { %p396_p1 = pnand %p395_p0, %p389_p11 }
  0x21   :  { %399 = shalt.err (!%p396_p1)
}
  0x22   :  { %s432_s0 = smov 32   ;;  %s433_s5 = smov 2  }
  0x23   :  { %41 = dma.hbm_to_vmem [thread:$0]  %s527_s1, 64, %s36_s24, [#allocation7], %s432_s0, %s432_s0, %s433_s5  }
  0x24   :  { %422 = dma.done.wait [#allocation4], 256  }
  0x25   :  { %423 = vsyncadd [#allocation4], 4294967040 }
  0x26   :  { %424 = dma.done.wait [#allocation7], 64  }
  0x27   :  { %425 = vsyncadd [#allocation7], 4294967232  ;;  %v56_v0 = vlaneseq  ;;  %v434_v2 = vmov 0.0   ;;  %vm82_vm1 = vcmask 1043456   ;;  %v72_v3 = vld [vmem:[#allocation3] sm:$0xff]  ;;  %v73_v4 = vld [vmem:[#allocation3 + $0x8] sm:$0xff] }
  0x28   :  { %v78_v5 = vcombine.high %v72_v3, %v72_v3  ;;  %v79_v6 = vcombine.high %v73_v4, %v73_v4  ;;  %v83_v7 = vsel %vm82_vm1, %v72_v3, -inf  ;;  %v97_v8 = vsel %vm82_vm1, %v73_v4, -inf  ;;  %v74_v45 = vld [vmem:[#allocation6] sm:$0x3]  ;;  %v75_v46 = vld [vmem:[#allocation6 + $0x2] sm:$0x3] }
  0x29   :  { %vm480_vm0 = vcmp.lt.s32.totalorder %v56_v0, 256  ;;  %v84_v9 = vrot.slane %v83_v7, 4  ;;  %v98_v10 = vrot.slane %v97_v8, 4  ;;  %v435_v33 = vmov 839922192   ;;  %s437_s1 = smov [#allocation8]  }
  0x2a   :  { %60 = vst.msk [vmem:[#allocation8] sm:$0x3] %vm480_vm0, %v434_v2  ;;  %61 = vst.msk [vmem:[#allocation8 + $0x2] sm:$0x3] %vm480_vm0, %v434_v2  ;;  %v90_v11 = vsel %vm82_vm1, %v78_v5, -inf  ;;  %v104_v12 = vsel %vm82_vm1, %v79_v6, -inf  ;;  %v65_v34 = vunpack.c.l.s4 %v435_v33 }
  0x2b   :  { %v85_v13 = vmax.f32 %v83_v7, %v84_v9  ;;  %v91_v14 = vrot.slane %v90_v11, 4  ;;  %v99_v15 = vmax.f32 %v97_v8, %v98_v10  ;;  %v105_v16 = vrot.slane %v104_v12, 4  ;;  %s311_s8 = sshll.u32 %s437_s1, 4  ;;  %s312_s8 = int_to_ptr.vmem [resolvable:$true] %s311_s8 }
  0x2c   :  { %v492_v35 = vshrl.u32 %v56_v0, 7  ;;  %v66_v40 = vunpack.c.0.s8 %v65_v34  ;;  %s400_s9 = scalar_lea.vmem %s312_s8, 64  ;;  %p405_p3 = scmp.lt.s32.totalorder %s312_s8, %s312_s8 }
  0x2d   :  { %v86_v17 = vrot.slane %v85_v13, 2  ;;  %v92_v18 = vmax.f32 %v90_v11, %v91_v14  ;;  %v100_v19 = vrot.slane %v99_v15, 2  ;;  %v106_v20 = vmax.f32 %v104_v12, %v105_v16  ;;  %p401_p2 = scmp.ne.s32.totalorder %s312_s8, %s400_s9  ;;  %p406_p4 = scmp.lt.s32.totalorder %s400_s9, %s400_s9 }
  0x2e   :  { %v162_v43 = vsub.s32 0, %v492_v35  ;;  %v166_v44 = vsub.s32 1, %v492_v35  ;;  %v69_v49 = vsub.s32 %v66_v40, %v492_v35 }
  0x2f   :  { %v87_v21 = vmax.f32 %v85_v13, %v86_v17  ;;  %v93_v22 = vrot.slane %v92_v18, 2  ;;  %v101_v23 = vmax.f32 %v99_v15, %v100_v19  ;;  %v107_v24 = vrot.slane %v106_v20, 2  ;;  %p407_p5 = por %p406_p4, %p405_p3 }
  0x30   :  { %v163_v50 = vrot.slane %v74_v45, %v162_v43  ;;  %v167_v51 = vrot.slane %v74_v45, %v166_v44  ;;  %v171_v52 = vrot.slane %v75_v46, %v162_v43  ;;  %v175_v53 = vrot.slane %v75_v46, %v166_v44 }
  0x31   :  { %v88_v25 = vrot.slane %v87_v21, 1  ;;  %v94_v26 = vmax.f32 %v92_v18, %v93_v22  ;;  %v102_v27 = vrot.slane %v101_v23, 1  ;;  %v108_v28 = vmax.f32 %v106_v20, %v107_v24  ;;  %p408_p6 = pnand %p407_p5, %p401_p2 }
  0x32   :  { %v70_v54 = vrot.slane %v492_v35, %v69_v49  ;;  %v176_v55 = vcombine.low %v163_v50, %v167_v51  ;;  %v177_v56 = vcombine.low %v171_v52, %v175_v53 }
  0x33   :  { %v89_v29 = vmax.f32 %v87_v21, %v88_v25  ;;  %v95_v30 = vrot.slane %v94_v26, 1  ;;  %v103_v31 = vmax.f32 %v101_v23, %v102_v27  ;;  %v109_v32 = vrot.slane %v108_v28, 1 }
  0x34   :  { %vm178_vm2 = vcmp.eq.s32.totalorder %v70_v54, %v176_v55  ;;  %vm179_vm3 = vcmp.eq.s32.totalorder %v70_v54, %v177_v56 }
  0x35   :  { %v96_v36 = vmax.f32 %v94_v26, %v95_v30  ;;  %v110_v37 = vmax.f32 %v108_v28, %v109_v32 }
  0x37   :  { %v115_v38 = vcombine.low %v89_v29, %v96_v36  ;;  %v116_v39 = vcombine.low %v103_v31, %v110_v37 }
  0x39   :  { %v119_v41 = vsub.f32 %v72_v3, %v115_v38  ;;  %v120_v42 = vsub.f32 %v73_v4, %v116_v39 }
  0x3b   :  { %v121_v47 = vmul.f32 1.442695, %v119_v41  ;;  %v123_v48 = vmul.f32 1.442695, %v120_v42 }
  0x3d   :  { %336 = vpow2.f32 %v121_v47 }
  0x3e   :  { %338 = vpow2.f32 %v123_v48 }
  0x47   :  { %v337_v57 = vpop.eup %336 }
  0x48   :  { %v339_v58 = vpop.eup %338  ;;  %v180_v59 = vsel %vm178_vm2, %v337_v57, 0.0  ;;  %v127_v60 = vcombine.high %v337_v57, %v337_v57  ;;  %v131_v61 = vsel %vm82_vm1, %v337_v57, 0.0 }
  0x49   :  { %v181_v62 = vsel %vm179_vm3, %v339_v58, 0.0  ;;  %v184_v63 = vcombine.high %v180_v59, %v180_v59  ;;  %v188_v0 = vsel %vm82_vm1, %v180_v59, 0.0  ;;  %v132_v2 = vrot.slane %v131_v61, 4 }
  0x4a   :  { %v185_v3 = vcombine.high %v181_v62, %v181_v62  ;;  %v189_v4 = vrot.slane %v188_v0, 4  ;;  %v138_v5 = vsel %vm82_vm1, %v127_v60, 0.0  ;;  %v202_v11 = vsel %vm82_vm1, %v181_v62, 0.0 }
  0x4b   :  { %v195_v6 = vsel %vm82_vm1, %v184_v63, 0.0  ;;  %v133_v7 = vadd.f32 %v132_v2, %v131_v61  ;;  %v139_v8 = vrot.slane %v138_v5, 4  ;;  %v128_v12 = vcombine.high %v339_v58, %v339_v58 }
  0x4c   :  { %v190_v9 = vadd.f32 %v189_v4, %v188_v0  ;;  %v196_v10 = vrot.slane %v195_v6, 4  ;;  %v209_v16 = vsel %vm82_vm1, %v185_v3, 0.0  ;;  %v145_v17 = vsel %vm82_vm1, %v339_v58, 0.0 }
  0x4d   :  { %v134_v13 = vrot.slane %v133_v7, 2  ;;  %v140_v14 = vadd.f32 %v139_v8, %v138_v5  ;;  %v152_v18 = vsel %vm82_vm1, %v128_v12, 0.0  ;;  %v203_v19 = vrot.slane %v202_v11, 4 }
  0x4e   :  { %v197_v15 = vadd.f32 %v196_v10, %v195_v6  ;;  %v191_v22 = vrot.slane %v190_v9, 2  ;;  %v146_v23 = vrot.slane %v145_v17, 4  ;;  %v153_v24 = vrot.slane %v152_v18, 4 }
  0x4f   :  { %v135_v20 = vadd.f32 %v134_v13, %v133_v7  ;;  %v141_v21 = vrot.slane %v140_v14, 2  ;;  %v210_v25 = vrot.slane %v209_v16, 4  ;;  %v204_v31 = vadd.f32 %v203_v19, %v202_v11 }
  0x50   :  { %v198_v28 = vrot.slane %v197_v15, 2  ;;  %v147_v29 = vadd.f32 %v146_v23, %v145_v17  ;;  %v154_v30 = vadd.f32 %v153_v24, %v152_v18  ;;  %v192_v34 = vadd.f32 %v191_v22, %v190_v9 }
  0x51   :  { %v136_v26 = vrot.slane %v135_v20, 1  ;;  %v142_v27 = vadd.f32 %v141_v21, %v140_v14  ;;  %v211_v38 = vadd.f32 %v210_v25, %v209_v16  ;;  %v205_v43 = vrot.slane %v204_v31, 2 }
  0x52   :  { %v148_v36 = vrot.slane %v147_v29, 2  ;;  %v155_v37 = vrot.slane %v154_v30, 2  ;;  %v199_v40 = vadd.f32 %v198_v28, %v197_v15  ;;  %v193_v44 = vrot.slane %v192_v34, 1 }
  0x53   :  { %v137_v32 = vadd.f32 %v136_v26, %v135_v20  ;;  %v143_v33 = vrot.slane %v142_v27, 1  ;;  %v212_v47 = vrot.slane %v211_v38, 2  ;;  %v206_v51 = vadd.f32 %v205_v43, %v204_v31 }
  0x54   :  { %v149_v41 = vadd.f32 %v148_v36, %v147_v29  ;;  %v156_v42 = vadd.f32 %v155_v37, %v154_v30  ;;  %v200_v48 = vrot.slane %v199_v40, 1  ;;  %v194_v52 = vadd.f32 %v193_v44, %v192_v34  ;;  %v260_v44 = vld [vmem:[#allocation8] sm:$0x3] }
  0x55   :  { %v144_v39 = vadd.f32 %v143_v33, %v142_v27  ;;  %340 = vrcp.f32 %v137_v32  ;;  %v213_v53 = vadd.f32 %v212_v47, %v211_v38  ;;  %v207_v56 = vrot.slane %v206_v51, 1 }
  0x56   :  { %v150_v45 = vrot.slane %v149_v41, 1  ;;  %v157_v46 = vrot.slane %v156_v42, 1  ;;  %v201_v54 = vadd.f32 %v200_v48, %v199_v40  ;;  %v436_v22 = vmov 1966171168  }
  0x57   :  { %342 = vrcp.f32 %v144_v39  ;;  %v214_v59 = vrot.slane %v213_v53, 1  ;;  %v208_v62 = vadd.f32 %v207_v56, %v206_v51  ;;  %v268_v23 = vunpack.c.l.s4 %v436_v22 }
  0x58   :  { %v151_v49 = vadd.f32 %v150_v45, %v149_v41  ;;  %v158_v50 = vadd.f32 %v157_v46, %v156_v42 }
  0x59   :  { %v215_v2 = vadd.f32 %v214_v59, %v213_v53  ;;  %v269_v29 = vunpack.c.0.s8 %v268_v23 }
  0x5a   :  { %344 = vrcp.f32 %v151_v49 }
  0x5b   :  { %346 = vrcp.f32 %v158_v50  ;;  %v272_v37 = vsub.s32 %v269_v29, %v492_v35 }
  0x5f   :  { %v341_v55 = vpop.eup %340 }
  0x60   :  { %v217_v57 = vmul.f32 %v341_v55, %v194_v52  ;;  %v261_v52 = vld [vmem:[#allocation8 + $0x2] sm:$0x3] }
  0x61   :  { %v343_v58 = vpop.eup %342 }
  0x62   :  { %v219_v60 = vmul.f32 %v343_v58, %v201_v54  ;;  %v224_v61 = vsub.f32 1.0, %v217_v57 }
  0x64   :  { %v225_v63 = vsub.f32 1.0, %v219_v60  ;;  %v228_v0 = vmul.f32 %v224_v61, %v217_v57  ;;  %v345_v3 = vpop.eup %344 }
  0x65   :  { %v347_v6 = vpop.eup %346  ;;  %v221_v7 = vmul.f32 %v345_v3, %v208_v62 }
  0x66   :  { %v229_v4 = vmul.f32 %v225_v63, %v219_v60  ;;  %v240_v5 = vadd.f32 1.0, %v228_v0  ;;  %v223_v10 = vmul.f32 %v347_v6, %v215_v2  ;;  %v232_v15 = vmul.f32 2.0, %v228_v0 }
  0x67   :  { %v226_v11 = vsub.f32 1.0, %v221_v7 }
  0x68   :  { %v241_v8 = vadd.f32 1.0, %v229_v4  ;;  %v244_v9 = vadd.f32 1.0, %v240_v5  ;;  %v227_v13 = vsub.f32 1.0, %v223_v10  ;;  %v233_v18 = vmul.f32 2.0, %v229_v4 }
  0x69   :  { %v230_v14 = vmul.f32 %v226_v11, %v221_v7  ;;  %v236_v21 = vadd.f32 1.0, %v232_v15 }
  0x6a   :  { %v245_v12 = vadd.f32 1.0, %v241_v8  ;;  %348 = vrcp.f32 %v244_v9  ;;  %v231_v16 = vmul.f32 %v227_v13, %v223_v10  ;;  %v237_v25 = vadd.f32 1.0, %v233_v18 }
  0x6b   :  { %v242_v17 = vadd.f32 1.0, %v230_v14  ;;  %v234_v27 = vmul.f32 2.0, %v230_v14 }
  0x6c   :  { %350 = vrcp.f32 %v245_v12  ;;  %v243_v19 = vadd.f32 1.0, %v231_v16  ;;  %v235_v31 = vmul.f32 2.0, %v231_v16 }
  0x6d   :  { %v246_v20 = vadd.f32 1.0, %v242_v17  ;;  %v238_v34 = vadd.f32 1.0, %v234_v27 }
  0x6e   :  { %v247_v24 = vadd.f32 1.0, %v243_v19  ;;  %v239_v38 = vadd.f32 1.0, %v235_v31 }
  0x6f   :  { %352 = vrcp.f32 %v246_v20 }
  0x70   :  { %354 = vrcp.f32 %v247_v24 }
  0x74   :  { %v349_v26 = vpop.eup %348 }
  0x75   :  { %v249_v28 = vmul.f32 %v349_v26, %v236_v21 }
  0x76   :  { %v351_v30 = vpop.eup %350 }
  0x77   :  { %v251_v32 = vmul.f32 %v351_v30, %v237_v25  ;;  %v256_v33 = vsub.f32 1.0, %v249_v28 }
  0x79   :  { %v257_v36 = vsub.f32 1.0, %v251_v32  ;;  %v353_v39 = vpop.eup %352 }
  0x7a   :  { %v253_v41 = vmul.f32 %v353_v39, %v238_v34  ;;  %v355_v42 = vpop.eup %354 }
  0x7b   :  { %v266_v40 = vcombine.low %v256_v33, %v257_v36  ;;  %v255_v45 = vmul.f32 %v355_v42, %v239_v38 }
  0x7c   :  { %v258_v46 = vsub.f32 1.0, %v253_v41 }
  0x7d   :  { %v273_v43 = vrot.slane %v266_v40, %v272_v37  ;;  %v259_v48 = vsub.f32 1.0, %v255_v45 }
  0x7f   :  { %v280_v47 = vrot.slane %v273_v43, %v272_v37  ;;  %v281_v50 = vcombine.low %v258_v46, %v259_v48 }
  0x81   :  { %v298_v49 = vadd.f32 %v280_v47, %v260_v44  ;;  %v288_v51 = vrot.slane %v281_v50, %v272_v37 }
  0x83   :  { %304 = vst.msk [vmem:[#allocation8] sm:$0x3] %vm480_vm0, %v298_v49  ;;  %v295_v35 = vrot.slane %v288_v51, %v272_v37 }
  0x85   :  { %v299_v53 = vadd.f32 %v295_v35, %v261_v52 }
  0x87   :  { %305 = vst.msk [vmem:[#allocation8 + $0x2] sm:$0x3] %vm480_vm0, %v299_v53 }
  0x88   :  { %411 = shalt.err (!%p408_p6)
}
  0x89   :  { %s412_s12 = scalar_lea.hbm %s528_s2, 64 }
  0x8a   :  { %p413_p7 = scmp.ne.s32.totalorder %s528_s2, %s412_s12  ;;  %p416_p8 = scmp.lt.u32.totalorder %s412_s12, %s528_s2 }
  0x8c   :  { %p418_p9 = pnand %p416_p8, %p413_p7 }
  0x8e   :  { %421 = shalt.err (!%p418_p9)
}
  0x8f   :  { %317 = dma.vmem_to_hbm [thread:$0]  %s312_s8, 64, %s528_s2, [#allocation5], %s432_s0, %s432_s0, %s433_s5  }
  0x90   :  { %426 = dma.done.wait [#allocation5], 64  }
  0x91   :  { %427 = vsyncadd [#allocation5], 4294967232 }
  0x92   :  { %321 = vsyncpa [#allocation4], 1 }
  0x93   :  { %322 = vsyncpa [#allocation7], 1 }
  0x94   :  { %323 = vsyncpa [#allocation5], 1 }

</bundles_post_ra>
